<compile_context>
chip_gen: v6e
topology: v6e:2x2x1
jax: 0.10.0
libtpu: 0.0.40
codegen_flags: <defaults>
</compile_context>

<pallas_src>
import functools
import math

import jax
import jax.numpy as jnp
from jax.experimental import pallas as pl
from jax.experimental.pallas import tpu as pltpu

_LEAKY_SLOPE = 0.1
_TILE_ROWS_DEFAULT = 8192          # logical rows of x per grid step
_VMEM_LIMIT_BYTES = 48 * 1024 * 1024  # explicit scoped-VMEM limit (v7x-safe, <64 MiB)


def _make_act(act):
    if act == "relu":
        return lambda h: jnp.maximum(h, 0.0)
    elif act == "leaky_relu":
        return lambda h: jnp.where(h > 0, h, _LEAKY_SLOPE * h)
    else:
        raise ValueError(f"unsupported act: {act}")


def _round_up(x, m):
    return ((x + m - 1) // m) * m


def _block_diag(w, p):
    """(a, b) -> (p*a, p*b) block-diagonal replication of w (built once, host-side)."""
    if p == 1:
        return w
    a, b = w.shape
    out = jnp.zeros((p * a, p * b), w.dtype)
    for i in range(p):
        out = out.at[i * a:(i + 1) * a, i * b:(i + 1) * b].set(w)
    return out


def _score_decoder_kernel(act, *refs):
    """refs = (x_ref, w0_ref, b0_ref, w1_ref, b1_ref, ..., o_ref).

    Processes one (tm, pack*n_in) lane-dense tile of packed x per grid step;
    (block-diagonal) weights/biases are VMEM-resident across all grid steps.
    """
    x_ref = refs[0]
    o_ref = refs[-1]
    param_refs = refs[1:-1]
    n_layers = len(param_refs) // 2

    act_fn = _make_act(act)
    operand_dtype = x_ref.dtype

    h = x_ref[...]                                   # native dtype -> MXU operand
    for i in range(n_layers):
        w = param_refs[2 * i][...]                   # native dtype (no per-step cast)
        b = param_refs[2 * i + 1][...]               # pre-cast f32 in wrapper
        z = jnp.dot(h, w, preferred_element_type=jnp.float32) + b
        if i < n_layers - 1:                         # final BasicLinear has act=None
            h = act_fn(z).astype(operand_dtype)      # bias/act f32, keep operands narrow
        else:
            h = z
    o_ref[...] = h.astype(o_ref.dtype)


def score_decoder_forward(x, params, act="leaky_relu",
                          tile_rows=_TILE_ROWS_DEFAULT, core_parallel=False):
    """Run the ScoreDecoder MLP.

    x:       (..., n_in)   -- any number of leading dims (like PyTorch nn.Linear)
    params:  list of (W, b) with W: (n_in_i, n_out_i), b: (n_out_i,)
    core_parallel: set True on v7x (2 TensorCores/chip) to split the row grid
                   across cores via pltpu.CORE_PARALLEL.
    returns: (..., n_out_last)
    """
    orig_shape = x.shape
    n_in = orig_shape[-1]
    n_out_last = params[-1][0].shape[1]
    x2d = x.reshape(-1, n_in)
    M = x2d.shape[0]

    # --- lane packing: put `pack` logical rows side by side on the 128 lanes ---
    pack = 128 // n_in if (n_in < 128 and 128 % n_in == 0) else 1

    # dtype-aware sublane multiple (f32: 8, bf16: 16, int8/fp8: 32)
    sub_mult = max(8, 32 // jnp.dtype(x2d.dtype).itemsize)

    # Pad rows once so the packed row count is a multiple of sub_mult (keeps
    # every block legal and never larger than the array). Padded rows produce
    # garbage scores that are sliced off below.
    M_pad = _round_up(M, pack * sub_mult)
    if M_pad != M:
        x2d = jnp.pad(x2d, ((0, M_pad - M), (0, 0)))
    Mp = M_pad // pack
    xp = x2d.reshape(Mp, pack * n_in)        # contiguous reshape -> no data movement

    # --- block-diagonal weights (built once), biases pre-cast to f32 ---
    flat_args = []
    in_specs = [pl.BlockSpec((0, 0), lambda i: (i, 0))]  # placeholder, fixed below
    for (w, b) in params:
        w_p = _block_diag(w, pack)                        # (pack*n_in_i, pack*n_out_i)
        b_p = jnp.tile(b, pack).reshape(1, -1).astype(jnp.float32)
        flat_args.append(w_p)
        flat_args.append(b_p)
    n_out_p = pack * n_out_last

    # --- tile size (packed rows): big tiles to amortize per-step overhead ---
    tm = _round_up(max(1, tile_rows // pack), sub_mult)
    tm = min(tm, Mp)
    num_tiles = pl.cdiv(Mp, tm)

    in_specs = [pl.BlockSpec((tm, pack * n_in), lambda i: (i, 0))]
    for a in flat_args:
        in_specs.append(pl.BlockSpec(a.shape, lambda i: (0, 0)))

    # Advisory cost estimate: HBM-read bound on x at these sizes.
    flops = 2 * Mp * sum(int(a.shape[0]) * int(a.shape[1])
                         for a in flat_args[0::2])
    bytes_accessed = (
        xp.size * xp.dtype.itemsize
        + sum(a.size * a.dtype.itemsize for a in flat_args)
        + Mp * n_out_p * x.dtype.itemsize
    )
    cost = pl.CostEstimate(flops=int(flops), transcendentals=0,
                           bytes_accessed=int(bytes_accessed))

    dim_sem = (pltpu.CORE_PARALLEL,) if core_parallel else ("parallel",)

    kernel = functools.partial(_score_decoder_kernel, act)

    out_packed = pl.pallas_call(
        kernel,
        out_shape=jax.ShapeDtypeStruct((Mp, n_out_p), x.dtype),
        grid=(num_tiles,),
        in_specs=in_specs,
        out_specs=pl.BlockSpec((tm, n_out_p), lambda i: (i, 0)),
        compiler_params=pltpu.CompilerParams(
            dimension_semantics=dim_sem,
            vmem_limit_bytes=_VMEM_LIMIT_BYTES,
        ),
        cost_estimate=cost,
    )(xp, *flat_args)

    # (Mp, pack*n_out) -> (M_pad, n_out): contiguous reshape, order-preserving.
    out2d = out_packed.reshape(M_pad, n_out_last)[:M]
    return out2d.reshape(orig_shape[:-1] + (n_out_last,))


def init_score_decoder_params(key, n_in, n_outs, dtype=jnp.float32):
    """Deterministic init mimicking nn.Linear's kaiming-uniform-ish scheme.

    Layer i maps dims[i] -> dims[i+1]; weights stored transposed (n_in, n_out).
    """
    dims = [n_in] + list(n_outs)
    params = []
    for i in range(len(dims) - 1):
        key, kw, kb = jax.random.split(key, 3)
        fan_in = dims[i]
        bound = 1.0 / math.sqrt(fan_in)
        w = jax.random.uniform(kw, (dims[i], dims[i + 1]), dtype=dtype,
                               minval=-bound, maxval=bound)
        b = jax.random.uniform(kb, (dims[i + 1],), dtype=dtype,
                               minval=-bound, maxval=bound)
        params.append((w, b))
    return params


def _reference_forward(x, params, act="leaky_relu"):
    """Plain-JAX reference (mirrors the PyTorch ScoreDecoder forward)."""
    act_fn = _make_act(act)
    h = x.astype(jnp.float32)
    for i, (w, b) in enumerate(params):
        h = h @ w.astype(jnp.float32) + b.astype(jnp.float32)
        if i < len(params) - 1:
            h = act_fn(h)
    return h.astype(x.dtype)


if __name__ == "__main__":
    # Module config: ScoreDecoder(n_in=32, n_outs=[64, 32, 1], act='leaky_relu', dropout=0)
    # dropout=0 -> no Dropout layers (eval-mode dropout would be identity anyway).
    n_in = 32
    n_outs = [64, 32, 1]
    act = "leaky_relu"

    params = init_score_decoder_params(jax.random.PRNGKey(0), n_in, n_outs)

    key = jax.random.PRNGKey(0)
    key, k1, k2, k3 = jax.random.split(key, 4)

    # --- small 3-D input (single tile; exercises the row-pad path, M=16 -> 32) ---
    x_small = jax.random.normal(k1, (2, 8, n_in), dtype=jnp.float32)
    out_small = jax.block_until_ready(score_decoder_forward(x_small, params, act=act))
    ref_small = _reference_forward(x_small, params, act=act)
    assert out_small.shape == (2, 8, 1), out_small.shape
    assert jnp.allclose(out_small, ref_small, atol=1e-5, rtol=1e-5), (
        float(jnp.max(jnp.abs(out_small - ref_small))))

    # --- larger input with small tile override: multi-tile grid + partial last tile
    #     (M=2400 -> 600 packed rows, tm=128 packed rows -> 5 tiles, last = 88 rows)
    x_large = jax.random.normal(k2, (4, 600, n_in), dtype=jnp.float32)
    out_large = jax.block_until_ready(
        score_decoder_forward(x_large, params, act=act, tile_rows=512))
    ref_large = _reference_forward(x_large, params, act=act)
    assert out_large.shape == (4, 600, 1), out_large.shape
    assert jnp.allclose(out_large, ref_large, atol=1e-5, rtol=1e-5), (
        float(jnp.max(jnp.abs(out_large - ref_large))))

    # --- same data with the tuned default tile (single 2048-packed-row tile) ---
    out_default = jax.block_until_ready(score_decoder_forward(x_large, params, act=act))
    assert jnp.allclose(out_default, ref_large, atol=1e-5, rtol=1e-5), (
        float(jnp.max(jnp.abs(out_default - ref_large))))

    # --- odd row count (M=21): exercises pack + sublane padding path ---
    x_odd = jax.random.normal(k3, (3, 7, n_in), dtype=jnp.float32)
    out_odd = jax.block_until_ready(score_decoder_forward(x_odd, params, act=act))
    ref_odd = _reference_forward(x_odd, params, act=act)
    assert out_odd.shape == (3, 7, 1), out_odd.shape
    assert jnp.allclose(out_odd, ref_odd, atol=1e-5, rtol=1e-5), (
        float(jnp.max(jnp.abs(out_odd - ref_odd))))

    print("KERNEL_OK")
</pallas_src>

<mosaic_0001>
module attributes {stable_mosaic.version = 11 : i64} {
  func.func @_score_decoder_kernel(%arg0: i32, %arg1: memref<8x128xf32, #tpu.memory_space<vmem>>, %arg2: memref<128x256xf32, #tpu.memory_space<vmem>>, %arg3: memref<1x256xf32, #tpu.memory_space<vmem>>, %arg4: memref<256x128xf32, #tpu.memory_space<vmem>>, %arg5: memref<1x128xf32, #tpu.memory_space<vmem>>, %arg6: memref<128x4xf32, #tpu.memory_space<vmem>>, %arg7: memref<1x4xf32, #tpu.memory_space<vmem>>, %arg8: memref<8x4xf32, #tpu.memory_space<vmem>>) attributes {dimension_semantics = [#tpu.dimension_semantics<parallel>], iteration_bounds = array<i64: 1>, scalar_prefetch = 0 : i64, scratch_operands = 0 : i64, tpu.core_type = #tpu.core_type<tc>, window_params = [{transform_indices = @transform_0, window_bounds = array<i64: 8, 128>}, {pipeline_mode = #tpu.pipeline_mode<synchronous>, transform_indices = @transform_1, window_bounds = array<i64: 128, 256>}, {pipeline_mode = #tpu.pipeline_mode<synchronous>, transform_indices = @transform_2, window_bounds = array<i64: 1, 256>}, {pipeline_mode = #tpu.pipeline_mode<synchronous>, transform_indices = @transform_3, window_bounds = array<i64: 256, 128>}, {pipeline_mode = #tpu.pipeline_mode<synchronous>, transform_indices = @transform_4, window_bounds = array<i64: 1, 128>}, {pipeline_mode = #tpu.pipeline_mode<synchronous>, transform_indices = @transform_5, window_bounds = array<i64: 128, 4>}, {pipeline_mode = #tpu.pipeline_mode<synchronous>, transform_indices = @transform_6, window_bounds = array<i64: 1, 4>}, {transform_indices = @transform_7, window_bounds = array<i64: 8, 4>}]} {
    %c0 = arith.constant 0 : index
    %c0_0 = arith.constant 0 : index
    %0 = vector.load %arg1[%c0, %c0_0] : memref<8x128xf32, #tpu.memory_space<vmem>>, vector<8x128xf32>
    %c0_1 = arith.constant 0 : index
    %c0_2 = arith.constant 0 : index
    %1 = vector.load %arg2[%c0_1, %c0_2] : memref<128x256xf32, #tpu.memory_space<vmem>>, vector<128x256xf32>
    %c0_3 = arith.constant 0 : index
    %c0_4 = arith.constant 0 : index
    %2 = vector.load %arg3[%c0_3, %c0_4] : memref<1x256xf32, #tpu.memory_space<vmem>>, vector<1x256xf32>
    %cst = arith.constant dense<0.000000e+00> : vector<8x256xf32>
    %3 = tpu.matmul %0, %1, %cst {dimension_numbers = #tpu.dot_dimension_numbers<[1], [0], [0], [1], [0, 0, 1, 1], [], []>} : vector<8x128xf32>, vector<128x256xf32>, vector<8x256xf32> -> vector<8x256xf32>
    %4 = vector.broadcast %2 : vector<1x256xf32> to vector<8x256xf32>
    %5 = arith.addf %3, %4 : vector<8x256xf32>
    %cst_5 = arith.constant 0.000000e+00 : f32
    %6 = vector.broadcast %cst_5 : f32 to vector<8x256xf32>
    %7 = arith.cmpf ogt, %5, %6 : vector<8x256xf32>
    %cst_6 = arith.constant 1.000000e-01 : f32
    %8 = vector.broadcast %cst_6 : f32 to vector<8x256xf32>
    %9 = arith.mulf %8, %5 : vector<8x256xf32>
    %10 = arith.select %7, %5, %9 : vector<8x256xi1>, vector<8x256xf32>
    %c0_7 = arith.constant 0 : index
    %c0_8 = arith.constant 0 : index
    %11 = vector.load %arg4[%c0_7, %c0_8] : memref<256x128xf32, #tpu.memory_space<vmem>>, vector<256x128xf32>
    %c0_9 = arith.constant 0 : index
    %c0_10 = arith.constant 0 : index
    %12 = vector.load %arg5[%c0_9, %c0_10] : memref<1x128xf32, #tpu.memory_space<vmem>>, vector<1x128xf32>
    %cst_11 = arith.constant dense<0.000000e+00> : vector<8x128xf32>
    %13 = tpu.matmul %10, %11, %cst_11 {dimension_numbers = #tpu.dot_dimension_numbers<[1], [0], [0], [1], [0, 0, 1, 1], [], []>} : vector<8x256xf32>, vector<256x128xf32>, vector<8x128xf32> -> vector<8x128xf32>
    %14 = vector.broadcast %12 : vector<1x128xf32> to vector<8x128xf32>
    %15 = arith.addf %13, %14 : vector<8x128xf32>
    %cst_12 = arith.constant 0.000000e+00 : f32
    %16 = vector.broadcast %cst_12 : f32 to vector<8x128xf32>
    %17 = arith.cmpf ogt, %15, %16 : vector<8x128xf32>
    %cst_13 = arith.constant 1.000000e-01 : f32
    %18 = vector.broadcast %cst_13 : f32 to vector<8x128xf32>
    %19 = arith.mulf %18, %15 : vector<8x128xf32>
    %20 = arith.select %17, %15, %19 : vector<8x128xi1>, vector<8x128xf32>
    %c0_14 = arith.constant 0 : index
    %c0_15 = arith.constant 0 : index
    %21 = vector.load %arg6[%c0_14, %c0_15] : memref<128x4xf32, #tpu.memory_space<vmem>>, vector<128x4xf32>
    %c0_16 = arith.constant 0 : index
    %c0_17 = arith.constant 0 : index
    %22 = vector.load %arg7[%c0_16, %c0_17] : memref<1x4xf32, #tpu.memory_space<vmem>>, vector<1x4xf32>
    %cst_18 = arith.constant dense<0.000000e+00> : vector<8x4xf32>
    %23 = tpu.matmul %20, %21, %cst_18 {dimension_numbers = #tpu.dot_dimension_numbers<[1], [0], [0], [1], [0, 0, 1, 1], [], []>} : vector<8x128xf32>, vector<128x4xf32>, vector<8x4xf32> -> vector<8x4xf32>
    %24 = vector.broadcast %22 : vector<1x4xf32> to vector<8x4xf32>
    %25 = arith.addf %23, %24 : vector<8x4xf32>
    %c0_19 = arith.constant 0 : index
    %c0_20 = arith.constant 0 : index
    %26 = vector.load %arg8[%c0_19, %c0_20] : memref<8x4xf32, #tpu.memory_space<vmem>>, vector<8x4xf32>
    tpu.vector_store %arg8[%c0_19, %c0_20], %25 {strides = array<i32>} : memref<8x4xf32, #tpu.memory_space<vmem>>, vector<8x4xf32>,
    return
  }
  func.func @transform_0(%arg0: i32) -> (i32, i32) {
    %c0_i32 = arith.constant 0 : i32
    %c0_i32_0 = arith.constant 0 : i32
    return %arg0, %c0_i32 : i32, i32
  }
  func.func @transform_1(%arg0: i32) -> (i32, i32) {
    %c0_i32 = arith.constant 0 : i32
    %c0_i32_0 = arith.constant 0 : i32
    %c0_i32_1 = arith.constant 0 : i32
    return %c0_i32, %c0_i32_0 : i32, i32
  }
  func.func @transform_2(%arg0: i32) -> (i32, i32) {
    %c0_i32 = arith.constant 0 : i32
    %c0_i32_0 = arith.constant 0 : i32
    %c0_i32_1 = arith.constant 0 : i32
    return %c0_i32, %c0_i32_0 : i32, i32
  }
  func.func @transform_3(%arg0: i32) -> (i32, i32) {
    %c0_i32 = arith.constant 0 : i32
    %c0_i32_0 = arith.constant 0 : i32
    %c0_i32_1 = arith.constant 0 : i32
    return %c0_i32, %c0_i32_0 : i32, i32
  }
  func.func @transform_4(%arg0: i32) -> (i32, i32) {
    %c0_i32 = arith.constant 0 : i32
    %c0_i32_0 = arith.constant 0 : i32
    %c0_i32_1 = arith.constant 0 : i32
    return %c0_i32, %c0_i32_0 : i32, i32
  }
  func.func @transform_5(%arg0: i32) -> (i32, i32) {
    %c0_i32 = arith.constant 0 : i32
    %c0_i32_0 = arith.constant 0 : i32
    %c0_i32_1 = arith.constant 0 : i32
    return %c0_i32, %c0_i32_0 : i32, i32
  }
  func.func @transform_6(%arg0: i32) -> (i32, i32) {
    %c0_i32 = arith.constant 0 : i32
    %c0_i32_0 = arith.constant 0 : i32
    %c0_i32_1 = arith.constant 0 : i32
    return %c0_i32, %c0_i32_0 : i32, i32
  }
  func.func @transform_7(%arg0: i32) -> (i32, i32) {
    %c0_i32 = arith.constant 0 : i32
    %c0_i32_0 = arith.constant 0 : i32
    return %arg0, %c0_i32 : i32, i32
  }
}

</mosaic_0001>

<bundles_post_ra>
// kernel: tpu_custom_call.1
= control target key start
LH: loop header
LB: loop body
LE: loop exit
PB: predicated region body
PF: predicated region fallthrough
CT: control target
= control target key end

     0   :  { %12 = vsyncpa [#allocation3], 0  ;;  %s665_s0 = inlined_call_operand.vmem [shape: f32[8,128], index: 0, kind: input, shape index: {}]   ;;  %s666_s1 = inlined_call_operand.hbm [shape: f32[128,256], index: 1, kind: input, shape index: {}]   ;;  %s667_s2 = inlined_call_operand.vmem [shape: f32[1,256], index: 2, kind: input, shape index: {}]   ;;  %s668_s3 = inlined_call_operand.hbm [shape: f32[256,128], index: 3, kind: input, shape index: {}]   ;;  %s669_s4 = inlined_call_operand.vmem [shape: f32[1,128], index: 4, kind: input, shape index: {}]   ;;  %s670_s5 = inlined_call_operand.vmem [shape: f32[128,4], index: 5, kind: input, shape index: {}]   ;;  %s671_s6 = inlined_call_operand.vmem [shape: f32[1,4], index: 6, kind: input, shape index: {}]   ;;  %s672_s7 = inlined_call_operand.vmem [shape: f32[8,4], index: 7, kind: output, shape index: {}]  }
   0x1   :  { %13 = vsyncpa [#allocation5], 0  ;;  %s530_s24 = smov [#allocation2]  }
   0x2   :  { %s21_s25 = sshll.u32 %s530_s24, 4  ;;  %s22_s25 = int_to_ptr.vmem [resolvable:$true] %s21_s25 }
   0x3   :  { %s494_s26 = scalar_lea.vmem %s22_s25, 4096  ;;  %p499_p1 = scmp.lt.s32.totalorder %s22_s25, %s22_s25 }
   0x4   :  { %p495_p0 = scmp.ne.s32.totalorder %s22_s25, %s494_s26  ;;  %p500_p2 = scmp.lt.s32.totalorder %s494_s26, %s494_s26 }
   0x6   :  { %p501_p3 = por %p500_p2, %p499_p1 }
   0x8   :  { %p502_p4 = pnand %p501_p3, %p495_p0 }
   0xa   :  { %505 = shalt.err (!%p502_p4)
}
   0xb   :  { %s531_s27 = smov 256   ;;  %s532_s28 = smov 16  }
   0xc   :  { %27 = dma.hbm_to_vmem [thread:$0]  %s666_s1, 4096, %s22_s25, [#allocation3], %s531_s27, %s531_s27, %s532_s28  }
   0xd   :  { %s533_s8 = smov [#allocation4]  }
   0xe   :  { %s35_s9 = sshll.u32 %s533_s8, 4  ;;  %s36_s9 = int_to_ptr.vmem [resolvable:$true] %s35_s9 }
   0xf   :  { %s514_s10 = scalar_lea.vmem %s36_s9, 4096  ;;  %p519_p6 = scmp.lt.s32.totalorder %s36_s9, %s36_s9 }
  0x10   :  { %p515_p5 = scmp.ne.s32.totalorder %s36_s9, %s514_s10  ;;  %p520_p7 = scmp.lt.s32.totalorder %s514_s10, %s514_s10 }
  0x12   :  { %p521_p8 = por %p520_p7, %p519_p6 }
  0x14   :  { %p522_p9 = pnand %p521_p8, %p515_p5 }
  0x16   :  { %525 = shalt.err (!%p522_p9)
}
  0x17   :  { %s534_s11 = smov 128   ;;  %s535_s12 = smov 8  }
  0x18   :  { %41 = dma.hbm_to_vmem [thread:$0]  %s668_s3, 4096, %s36_s9, [#allocation5], %s534_s11, %s534_s11, %s535_s12  }
  0x19   :  { %526 = dma.done.wait [#allocation3], 4096  }
  0x1a   :  { %527 = vsyncadd [#allocation3], 4294963200 }
  0x1b   :  { %528 = dma.done.wait [#allocation5], 4096  }
  0x1c   :  { %529 = vsyncadd [#allocation5], 4294963200  ;;  %v536_v0 = vmov 0.0   ;;  %v86_v1 = vld [vmem:[#allocation2 + $0xf8] sm:$0xff]  ;;  %v85_v2 = vld [vmem:[#allocation2 + $0xf0] sm:$0xff]  ;;  %vm537_vm2 = vmmov 0  }
  0x1d   :  { %163 = vmatprep.mubr.f32.mxu0 %v536_v0  ;;  %v84_v3 = vld [vmem:[#allocation2 + $0xe8] sm:$0xff]  ;;  %99 = vmatprep.subr.mxu0 %v86_v1  ;;  %v83_v4 = vld [vmem:[#allocation2 + $0xe0] sm:$0xff]  ;;  %v82_v5 = vld [vmem:[#allocation2 + $0xd8] sm:$0xff]  ;;  %vm381_vm4 = vcmask 31744  }
  0x1e   :  { %100 = vmatpush1.msra.mxu0 %v85_v2  ;;  %v81_v6 = vld [vmem:[#allocation2 + $0xd0] sm:$0xff]  ;;  %v80_v7 = vld [vmem:[#allocation2 + $0xc8] sm:$0xff]  ;;  %v79_v8 = vld [vmem:[#allocation2 + $0xc0] sm:$0xff] }
  0x1f   :  { %101 = vmatprep.subr.mxu0 %v84_v3  ;;  %v78_v9 = vld [vmem:[#allocation2 + $0xb8] sm:$0xff]  ;;  %v77_v10 = vld [vmem:[#allocation2 + $0xb0] sm:$0xff]  ;;  %v76_v11 = vld [vmem:[#allocation2 + $0xa8] sm:$0xff] }
  0x20   :  { %102 = vmatpush1.msra.mxu0 %v83_v4  ;;  %v75_v12 = vld [vmem:[#allocation2 + $0xa0] sm:$0xff]  ;;  %v74_v13 = vld [vmem:[#allocation2 + $0x98] sm:$0xff]  ;;  %v73_v14 = vld [vmem:[#allocation2 + $0x90] sm:$0xff] }
  0x21   :  { %103 = vmatprep.subr.mxu0 %v82_v5  ;;  %v207_v15 = vld [vmem:[#allocation4 + $0xf8] sm:$0xff]  ;;  %v206_v17 = vld [vmem:[#allocation4 + $0xf0] sm:$0xff]  ;;  %v72_v18 = vld [vmem:[#allocation2 + $0x88] sm:$0xff] }
  0x22   :  { %104 = vmatpush1.msra.mxu0 %v81_v6  ;;  %v191_v16 = vld [vmem:[#allocation4 + $0x78] sm:$0xff]  ;;  %391 = vmatprep.subr.mxu1 %v207_v15  ;;  %v190_v19 = vld [vmem:[#allocation4 + $0x70] sm:$0xff]  ;;  %v71_v20 = vld [vmem:[#allocation2 + $0x80] sm:$0xff] }
  0x23   :  { %105 = vmatprep.subr.mxu0 %v80_v7  ;;  %392 = vmatpush3.msra.mxu1 %v191_v16  ;;  %v205_v21 = vld [vmem:[#allocation4 + $0xe8] sm:$0xff]  ;;  %v70_v22 = vld [vmem:[#allocation2 + $0x78] sm:$0xff]  ;;  %v69_v24 = vld [vmem:[#allocation2 + $0x70] sm:$0xff] }
  0x24   :  { %106 = vmatpush1.msra.mxu0 %v79_v8  ;;  %393 = vmatprep.subr.mxu1 %v206_v17  ;;  %v189_v23 = vld [vmem:[#allocation4 + $0x68] sm:$0xff]  ;;  %v204_v25 = vld [vmem:[#allocation4 + $0xe0] sm:$0xff]  ;;  %v203_v29 = vld [vmem:[#allocation4 + $0xd8] sm:$0xff] }
  0x25   :  { %107 = vmatprep.subr.mxu0 %v78_v9  ;;  %394 = vmatpush3.msra.mxu1 %v190_v19  ;;  %v68_v26 = vld [vmem:[#allocation2 + $0x68] sm:$0xff]  ;;  %v188_v27 = vld [vmem:[#allocation4 + $0x60] sm:$0xff]  ;;  %v66_v30 = vld [vmem:[#allocation2 + $0x58] sm:$0xff] }
  0x26   :  { %108 = vmatpush1.msra.mxu0 %v77_v10  ;;  %395 = vmatprep.subr.mxu1 %v205_v21  ;;  %v67_v28 = vld [vmem:[#allocation2 + $0x60] sm:$0xff]  ;;  %v187_v31 = vld [vmem:[#allocation4 + $0x58] sm:$0xff]  ;;  %v65_v32 = vld [vmem:[#allocation2 + $0x50] sm:$0xff] }
  0x27   :  { %109 = vmatprep.subr.mxu0 %v76_v11  ;;  %396 = vmatpush3.msra.mxu1 %v189_v23  ;;  %v202_v33 = vld [vmem:[#allocation4 + $0xd0] sm:$0xff]  ;;  %v64_v34 = vld [vmem:[#allocation2 + $0x48] sm:$0xff]  ;;  %v63_v36 = vld [vmem:[#allocation2 + $0x40] sm:$0xff] }
  0x28   :  { %110 = vmatpush1.msra.mxu0 %v75_v12  ;;  %397 = vmatprep.subr.mxu1 %v204_v25  ;;  %v186_v35 = vld [vmem:[#allocation4 + $0x50] sm:$0xff]  ;;  %v201_v37 = vld [vmem:[#allocation4 + $0xc8] sm:$0xff]  ;;  %v62_v38 = vld [vmem:[#allocation2 + $0x38] sm:$0xff] }
  0x29   :  { %111 = vmatprep.subr.mxu0 %v74_v13  ;;  %398 = vmatpush3.msra.mxu1 %v188_v27  ;;  %v185_v39 = vld [vmem:[#allocation4 + $0x48] sm:$0xff]  ;;  %v61_v40 = vld [vmem:[#allocation2 + $0x30] sm:$0xff]  ;;  %v200_v41 = vld [vmem:[#allocation4 + $0xc0] sm:$0xff] }
  0x2a   :  { %112 = vmatpush1.msra.mxu0 %v73_v14  ;;  %399 = vmatprep.subr.mxu1 %v203_v29  ;;  %v60_v42 = vld [vmem:[#allocation2 + $0x28] sm:$0xff]  ;;  %v184_v43 = vld [vmem:[#allocation4 + $0x40] sm:$0xff]  ;;  %v199_v45 = vld [vmem:[#allocation4 + $0xb8] sm:$0xff]  ;;  %v89_v14 = vlaneseq }
  0x2b   :  { %113 = vmatprep.subr.mxu0 %v72_v18  ;;  %400 = vmatpush3.msra.mxu1 %v187_v31  ;;  %v59_v44 = vld [vmem:[#allocation2 + $0x20] sm:$0xff]  ;;  %v58_v46 = vld [vmem:[#allocation2 + $0x18] sm:$0xff]  ;;  %v57_v48 = vld [vmem:[#allocation2 + $0x10] sm:$0xff] }
  0x2c   :  { %114 = vmatpush1.msra.mxu0 %v71_v20  ;;  %401 = vmatprep.subr.mxu1 %v202_v33  ;;  %v183_v47 = vld [vmem:[#allocation4 + $0x38] sm:$0xff]  ;;  %v198_v49 = vld [vmem:[#allocation4 + $0xb0] sm:$0xff]  ;;  %v56_v50 = vld [vmem:[#allocation2 + $0x8] sm:$0xff]  ;;  %v90_v15 = vshrl.u32 %v89_v14, 7 }
  0x2d   :  { %115 = vmatprep.subr.mxu0 %v70_v22  ;;  %402 = vmatpush3.msra.mxu1 %v186_v35  ;;  %v182_v51 = vld [vmem:[#allocation4 + $0x30] sm:$0xff]  ;;  %v55_v52 = vld [vmem:[#allocation2] sm:$0xff]  ;;  %v197_v53 = vld [vmem:[#allocation4 + $0xa8] sm:$0xff] }
  0x2e   :  { %116 = vmatpush1.msra.mxu0 %v69_v24  ;;  %403 = vmatprep.subr.mxu1 %v201_v37  ;;  %v54_v54 = vld [vmem:[%s665_s0] sm:$0xff]  ;;  %v181_v55 = vld [vmem:[#allocation4 + $0x28] sm:$0xff]  ;;  %v195_v58 = vld [vmem:[#allocation4 + $0x98] sm:$0xff]  ;;  %v91_v16 = vsub.s32 0, %v90_v15  ;;  %v95_v18 = vsub.s32 1, %v90_v15 }
  0x2f   :  { %117 = vmatprep.subr.mxu0 %v68_v26  ;;  %404 = vmatpush3.msra.mxu1 %v185_v39  ;;  %v196_v56 = vld [vmem:[#allocation4 + $0xa0] sm:$0xff]  ;;  %v179_v59 = vld [vmem:[#allocation4 + $0x18] sm:$0xff]  ;;  %v194_v60 = vld [vmem:[#allocation4 + $0x90] sm:$0xff] }
  0x30   :  { %118 = vmatpush1.msra.mxu0 %v67_v28  ;;  %405 = vmatprep.subr.mxu1 %v200_v41  ;;  %v180_v57 = vld [vmem:[#allocation4 + $0x20] sm:$0xff]  ;;  %v178_v61 = vld [vmem:[#allocation4 + $0x10] sm:$0xff]  ;;  %v193_v62 = vld [vmem:[#allocation4 + $0x88] sm:$0xff] }
  0x31   :  { %119 = vmatprep.subr.mxu0 %v66_v30  ;;  %406 = vmatpush3.msra.mxu1 %v184_v43  ;;  %v177_v63 = vld [vmem:[#allocation4 + $0x8] sm:$0xff]  ;;  %v192_v1 = vld [vmem:[#allocation4 + $0x80] sm:$0xff]  ;;  %v303_v3 = vld [vmem:[%s670_s5 + $0x78] sm:$0xff] }
  0x32   :  { %120 = vmatpush1.msra.mxu0 %v65_v32  ;;  %407 = vmatprep.subr.mxu1 %v199_v45  ;;  %v176_v2 = vld [vmem:[#allocation4] sm:$0xff]  ;;  %v302_v4 = vld [vmem:[%s670_s5 + $0x70] sm:$0xff]  ;;  %v301_v5 = vld [vmem:[%s670_s5 + $0x68] sm:$0xff] }
  0x33   :  { %121 = vmatprep.subr.mxu0 %v64_v34  ;;  %408 = vmatpush3.msra.mxu1 %v183_v47  ;;  %v300_v6 = vld [vmem:[%s670_s5 + $0x60] sm:$0xff]  ;;  %v299_v7 = vld [vmem:[%s670_s5 + $0x58] sm:$0xff]  ;;  %v298_v8 = vld [vmem:[%s670_s5 + $0x50] sm:$0xff] }
  0x34   :  { %122 = vmatpush1.msra.mxu0 %v63_v36  ;;  %409 = vmatprep.subr.mxu1 %v198_v49  ;;  %v297_v9 = vld [vmem:[%s670_s5 + $0x48] sm:$0xff]  ;;  %v296_v10 = vld [vmem:[%s670_s5 + $0x40] sm:$0xff]  ;;  %v295_v11 = vld [vmem:[%s670_s5 + $0x38] sm:$0xff] }
  0x35   :  { %123 = vmatprep.subr.mxu0 %v62_v38  ;;  %410 = vmatpush3.msra.mxu1 %v182_v51  ;;  %v294_v12 = vld [vmem:[%s670_s5 + $0x30] sm:$0xff]  ;;  %v293_v13 = vld [vmem:[%s670_s5 + $0x28] sm:$0xff]  ;;  %v87_v17 = vld [vmem:[%s667_s2] sm:$0x3] }
  0x36   :  { %124 = vmatpush1.msra.mxu0 %v61_v40  ;;  %411 = vmatprep.subr.mxu1 %v197_v53  ;;  %v92_v19 = vrot.slane %v87_v17, %v91_v16  ;;  %v96_v20 = vrot.slane %v87_v17, %v95_v18  ;;  %v292_v29 = vld [vmem:[%s670_s5 + $0x20] sm:$0xff]  ;;  %v291_v30 = vld [vmem:[%s670_s5 + $0x18] sm:$0xff]  ;;  %v290_v31 = vld [vmem:[%s670_s5 + $0x10] sm:$0xff] }
  0x37   :  { %125 = vmatprep.subr.mxu0 %v60_v42  ;;  %412 = vmatpush3.msra.mxu1 %v181_v55  ;;  %v289_v32 = vld [vmem:[%s670_s5 + $0x8] sm:$0xff]  ;;  %v288_v33 = vld [vmem:[%s670_s5] sm:$0xff] }
  0x38   :  { %126 = vmatpush1.msra.mxu0 %v59_v44  ;;  %413 = vmatprep.subr.mxu1 %v196_v56  ;;  %v389_v35 = vld [vmem:[%s669_s4] ss:$0 sm:$0xff] }
  0x39   :  { %127 = vmatprep.subr.mxu0 %v58_v46  ;;  %414 = vmatpush3.msra.mxu1 %v180_v57  ;;  %v390_v41 = vld [vmem:[%s671_s6] ss:$0 sm:$0xff] }
  0x3a   :  { %128 = vmatpush1.msra.mxu0 %v57_v48  ;;  %415 = vmatprep.subr.mxu1 %v195_v58 }
  0x3b   :  { %129 = vmatprep.subr.mxu0 %v56_v50  ;;  %416 = vmatpush3.msra.mxu1 %v179_v59 }
  0x3c   :  { %130 = vmatpush1.msra.mxu0 %v55_v52  ;;  %417 = vmatprep.subr.mxu1 %v194_v60 }
  0x3d   :  { %164 = vmatmul.mubr.f32.vlgmr.msra.gmra.mxu0 %v54_v54  ;;  %443 = vmatprep.subr.mxu0 %v536_v0 }
  0x3e   :  { %418 = vmatpush3.msra.mxu1 %v178_v61  ;;  %444 = vmatpush3.msra.mxu0 %v303_v3 }
  0x3f   :  { %419 = vmatprep.subr.mxu1 %v193_v62  ;;  %445 = vmatprep.subr.mxu0 %v536_v0 }
  0x40   :  { %420 = vmatpush3.msra.mxu1 %v177_v63  ;;  %446 = vmatpush3.msra.mxu0 %v302_v4 }
  0x41   :  { %421 = vmatprep.subr.mxu1 %v192_v1  ;;  %447 = vmatprep.subr.mxu0 %v536_v0 }
  0x42   :  { %422 = vmatpush3.msra.mxu1 %v176_v2  ;;  %448 = vmatpush3.msra.mxu0 %v301_v5 }
  0x43   :  { %449 = vmatprep.subr.mxu0 %v536_v0  ;;  %475 = vmatprep.mubr.msk.f32.mxu0 %vm537_vm2, %v536_v0 }
  0x44   :  { %450 = vmatpush3.msra.mxu0 %v300_v6 }
  0x45   :  { %451 = vmatprep.subr.mxu0 %v536_v0 }
  0x46   :  { %452 = vmatpush3.msra.mxu0 %v299_v7 }
  0x47   :  { %453 = vmatprep.subr.mxu0 %v536_v0 }
  0x48   :  { %454 = vmatpush3.msra.mxu0 %v298_v8 }
  0x49   :  { %455 = vmatprep.subr.mxu0 %v536_v0 }
  0x4a   :  { %456 = vmatpush3.msra.mxu0 %v297_v9 }
  0x4b   :  { %457 = vmatprep.subr.mxu0 %v536_v0 }
  0x4c   :  { %458 = vmatpush3.msra.mxu0 %v296_v10 }
  0x4d   :  { %459 = vmatprep.subr.mxu0 %v536_v0 }
  0x4e   :  { %460 = vmatpush3.msra.mxu0 %v295_v11 }
  0x4f   :  { %461 = vmatprep.subr.mxu0 %v536_v0 }
  0x50   :  { %462 = vmatpush3.msra.mxu0 %v294_v12 }
  0x51   :  { %463 = vmatprep.subr.mxu0 %v536_v0 }
  0x52   :  { %464 = vmatpush3.msra.mxu0 %v293_v13 }
  0x53   :  { %465 = vmatprep.subr.mxu0 %v536_v0 }
  0x54   :  { %466 = vmatpush3.msra.mxu0 %v292_v29 }
  0x55   :  { %467 = vmatprep.subr.mxu0 %v536_v0 }
  0x56   :  { %468 = vmatpush3.msra.mxu0 %v291_v30 }
  0x57   :  { %469 = vmatprep.subr.mxu0 %v536_v0 }
  0x58   :  { %470 = vmatpush3.msra.mxu0 %v290_v31 }
  0x59   :  { %471 = vmatprep.subr.mxu0 %v536_v0 }
  0x5a   :  { %472 = vmatpush3.msra.mxu0 %v289_v32 }
  0x5b   :  { %473 = vmatprep.subr.mxu0 %v536_v0 }
  0x5c   :  { %474 = vmatpush3.msra.mxu0 %v288_v33 }
  0xfd   :  { %v165_v21 = vpop.f32.mrf.mxu0 }
  0xfe   :  { %v166_v22 = vadd.f32 %v165_v21, %v92_v19 }
  0xff   :  { %v167_v23 = vpop.f32.mrf.mxu0 }
 0x100   :  { %v168_v24 = vadd.f32 %v167_v23, %v96_v20  ;;  %v172_v25 = vmul.f32 0.1, %v166_v22  ;;  %vm170_vm1 = vcmp.gt.f32.partialorder %v166_v22, 0.0 }
 0x102   :  { %vm171_vm0 = vcmp.gt.f32.partialorder %v168_v24, 0.0  ;;  %v173_v26 = vmul.f32 0.1, %v168_v24  ;;  %v174_v28 = vsel %vm170_vm1, %v166_v22, %v172_v25 }
 0x104   :  { %v175_v27 = vsel %vm171_vm0, %v168_v24, %v173_v26 }
 0x105   :  { %279 = vmatprep.mubr.f32.mxu1 %v175_v27 }
 0x106   :  { %280 = vmatmul.mubr.f32.vlgmr.msra.gmra.mxu1 %v174_v28 }
 0x1c6   :  { %v423_v34 = vpop.f32.mrf.mxu1 }
 0x1c8   :  { %v424_v36 = vpop.f32.mrf.mxu1 }
 0x1c9   :  { %v425_v37 = vadd.f32 %v424_v36, %v423_v34 }
 0x1cb   :  { %v282_v38 = vadd.f32 %v425_v37, %v389_v35 }
 0x1cd   :  { %v286_v39 = vmul.f32 0.1, %v282_v38  ;;  %vm285_vm3 = vcmp.gt.f32.partialorder %v282_v38, 0.0 }
 0x1cf   :  { %v287_v40 = vsel %vm285_vm3, %v282_v38, %v286_v39 }
 0x1d0   :  { %476 = vmatmul.mubr.f32.vlgmr.msra.gmra.mxu0 %v287_v40 }
 0x290   :  { %v377_v42 = vpop.f32.mrf.mxu0 }
 0x291   :  { %v378_v0 = vadd.f32 %v390_v41, %v377_v42 }
 0x292   :  { %v477_v43 = vpop.f32.mrf.mxu0 }
 0x293   :  { %382 = vst.msk [vmem:[%s672_s7] sm:$0xff] %vm381_vm4, %v378_v0 }
 0x294   :  { %387 = vsyncpa [#allocation3], 1 }
 0x295   :  { %388 = vsyncpa [#allocation5], 1 }

</bundles_post_ra>
